<compile_context>
chip_gen: v6e
topology: v6e:2x2x1
jax: 0.10.0
libtpu: 0.0.40
codegen_flags: <defaults>
</compile_context>

<pallas_src>
import functools

import jax
import jax.numpy as jnp
from jax.experimental import pallas as pl
from jax.experimental.pallas import tpu as pltpu

P_DROP = 0.65


def _round_up(n: int, m: int) -> int:
    return ((n + m - 1) // m) * m


def _tile_dims(B: int, OUT: int, tb: int, tn: int):
    """Tile sizes + padded array dims (TB multiple of 8, TN multiple of 128)."""
    TB = min(tb, _round_up(B, 8))
    TN = min(tn, _round_up(OUT, 128))
    return TB, TN, _round_up(B, TB), _round_up(OUT, TN)


def _keep_threshold_u32(keep_prob: float) -> int:
    # keep iff uniform-uint32 < keep_prob * 2^32  (integer-space test, no float math)
    return min(int(keep_prob * (1 << 32)), (1 << 32) - 1)


def classifier_kernel(x_ref, w_ref, b_ref, bits_ref, o_ref, *, keep_thresh, inv_keep):
    # ---- Linear: x @ W + b (MXU, f32 accumulate) ----
    y = jnp.dot(x_ref[...], w_ref[...], preferred_element_type=jnp.float32)
    y = y + b_ref[...]                       # (TB, TN) + (1, TN) broadcast
    # ---- ReLU (VPU) ----
    y = jnp.maximum(y, 0.0)
    # ---- Dropout (training mode, p=0.65): integer-threshold keep test ----
    keep = bits_ref[...] < jnp.uint32(keep_thresh)
    y = jnp.where(keep, y * inv_keep, 0.0)
    o_ref[...] = y.astype(o_ref.dtype)


def classifier_layer(x, w, b, key, *, p_drop=P_DROP, tb=256, tn=512):
    """x: (B, IN) f32, w: (IN, OUT) f32 (pre-transposed vs. torch), b: (OUT,) f32.

    Computes Linear -> ReLU -> Dropout(p_drop) in training mode (mask + 1/keep rescale).
    """
    B, IN = x.shape
    OUT = w.shape[1]
    keep_prob = 1.0 - p_drop

    TB, TN, B_pad, OUT_pad = _tile_dims(B, OUT, tb, tn)

    x_p = x if B_pad == B else jnp.pad(x, ((0, B_pad - B), (0, 0)))
    w_p = w if OUT_pad == OUT else jnp.pad(w, ((0, 0), (0, OUT_pad - OUT)))
    b_p = b if OUT_pad == OUT else jnp.pad(b, (0, OUT_pad - OUT))
    b2 = b_p.reshape(1, OUT_pad)

    # One uint32 random plane; each (i, j) tile sees distinct bits => no mask reuse.
    rbits = jax.random.bits(key, (B_pad, OUT_pad), dtype=jnp.uint32)

    kernel = functools.partial(
        classifier_kernel,
        keep_thresh=_keep_threshold_u32(keep_prob),
        inv_keep=1.0 / keep_prob,
    )

    # OUT tiles outermost, batch tiles innermost: the (IN, TN) weight slab is
    # revisited (not re-DMA'd) across the inner batch sweep.
    grid = (pl.cdiv(OUT_pad, TN), pl.cdiv(B_pad, TB))

    flops = 2 * B_pad * IN * OUT_pad
    bytes_accessed = (x_p.size + w_p.size + b2.size + rbits.size + B_pad * OUT_pad) * 4

    out = pl.pallas_call(
        kernel,
        out_shape=jax.ShapeDtypeStruct((B_pad, OUT_pad), x.dtype),
        grid=grid,
        in_specs=[
            pl.BlockSpec((TB, IN), lambda j, i: (i, 0)),   # x tile (varies with i)
            pl.BlockSpec((IN, TN), lambda j, i: (0, j)),   # w tile (constant over i)
            pl.BlockSpec((1, TN), lambda j, i: (0, j)),    # bias row
            pl.BlockSpec((TB, TN), lambda j, i: (i, j)),   # dropout bits
        ],
        out_specs=pl.BlockSpec((TB, TN), lambda j, i: (i, j)),
        compiler_params=pltpu.CompilerParams(
            dimension_semantics=("parallel", "parallel"),
            vmem_limit_bytes=64 * 1024 * 1024,
        ),
        cost_estimate=pl.CostEstimate(
            flops=flops, transcendentals=0, bytes_accessed=bytes_accessed),
    )(x_p, w_p, b2, rbits)

    return out[:B, :OUT]


if __name__ == "__main__":
    key = jax.random.PRNGKey(0)
    kx, kw, kb, kd = jax.random.split(key, 4)

    B, IN, OUT = 8, 32, 16

    x = jax.random.normal(kx, (B, IN), dtype=jnp.float32)
    # PyTorch nn.Linear default init: U(-1/sqrt(IN), 1/sqrt(IN))
    bound = 1.0 / (IN ** 0.5)
    w = jax.random.uniform(kw, (IN, OUT), jnp.float32, -bound, bound)
    b = jax.random.uniform(kb, (OUT,), jnp.float32, -bound, bound)

    out = jax.block_until_ready(classifier_layer(x, w, b, kd))
    assert out.shape == (B, OUT)

    # Pure-JAX reference using the identical dropout bits (same key / padded shape).
    keep_prob = 1.0 - P_DROP
    _, _, B_pad, OUT_pad = _tile_dims(B, OUT, 256, 512)
    rbits = jax.random.bits(kd, (B_pad, OUT_pad), dtype=jnp.uint32)[:B, :OUT]
    keep = rbits < jnp.uint32(_keep_threshold_u32(keep_prob))
    ref = jnp.where(keep, jnp.maximum(x @ w + b, 0.0) / keep_prob, 0.0)

    assert bool(jnp.all(out >= 0.0))            # ReLU + dropout => non-negative
    assert bool(jnp.allclose(out, ref, rtol=1e-5, atol=1e-5))

    print("KERNEL_OK")
</pallas_src>

<mosaic_0001>
module attributes {stable_mosaic.version = 11 : i64} {
  func.func @classifier_kernel(%arg0: i32, %arg1: i32, %arg2: memref<8x32xf32, #tpu.memory_space<vmem>>, %arg3: memref<32x128xf32, #tpu.memory_space<vmem>>, %arg4: memref<1x128xf32, #tpu.memory_space<vmem>>, %arg5: memref<8x128xi32, #tpu.memory_space<vmem>>, %arg6: memref<8x128xf32, #tpu.memory_space<vmem>>) attributes {dimension_semantics = [#tpu.dimension_semantics<parallel>, #tpu.dimension_semantics<parallel>], iteration_bounds = array<i64: 1, 1>, scalar_prefetch = 0 : i64, scratch_operands = 0 : i64, tpu.core_type = #tpu.core_type<tc>, window_params = [{transform_indices = @transform_0, window_bounds = array<i64: 8, 32>}, {transform_indices = @transform_1, window_bounds = array<i64: 32, 128>}, {transform_indices = @transform_2, window_bounds = array<i64: 1, 128>}, {transform_indices = @transform_3, window_bounds = array<i64: 8, 128>}, {transform_indices = @transform_4, window_bounds = array<i64: 8, 128>}]} {
    %c0 = arith.constant 0 : index
    %c0_0 = arith.constant 0 : index
    %0 = vector.load %arg2[%c0, %c0_0] : memref<8x32xf32, #tpu.memory_space<vmem>>, vector<8x32xf32>
    %c0_1 = arith.constant 0 : index
    %c0_2 = arith.constant 0 : index
    %1 = vector.load %arg3[%c0_1, %c0_2] : memref<32x128xf32, #tpu.memory_space<vmem>>, vector<32x128xf32>
    %cst = arith.constant dense<0.000000e+00> : vector<8x128xf32>
    %2 = tpu.matmul %0, %1, %cst {dimension_numbers = #tpu.dot_dimension_numbers<[1], [0], [0], [1], [0, 0, 1, 1], [], []>} : vector<8x32xf32>, vector<32x128xf32>, vector<8x128xf32> -> vector<8x128xf32>
    %c0_3 = arith.constant 0 : index
    %c0_4 = arith.constant 0 : index
    %3 = vector.load %arg4[%c0_3, %c0_4] : memref<1x128xf32, #tpu.memory_space<vmem>>, vector<1x128xf32>
    %4 = vector.broadcast %3 : vector<1x128xf32> to vector<8x128xf32>
    %5 = arith.addf %2, %4 : vector<8x128xf32>
    %cst_5 = arith.constant 0.000000e+00 : f32
    %6 = vector.broadcast %cst_5 : f32 to vector<8x128xf32>
    %7 = arith.maximumf %5, %6 : vector<8x128xf32>
    %c0_6 = arith.constant 0 : index
    %c0_7 = arith.constant 0 : index
    %8 = vector.load %arg5[%c0_6, %c0_7] : memref<8x128xi32, #tpu.memory_space<vmem>>, vector<8x128xi32>
    %c1503238553_i32 = arith.constant 1503238553 : i32
    %9 = vector.broadcast %c1503238553_i32 : i32 to vector<8x128xi32>
    %10 = arith.cmpi ult, %8, %9 : vector<8x128xi32>
    %cst_8 = arith.constant 2.85714293 : f32
    %11 = vector.broadcast %cst_8 : f32 to vector<8x128xf32>
    %12 = arith.mulf %7, %11 : vector<8x128xf32>
    %cst_9 = arith.constant 0.000000e+00 : f32
    %13 = vector.broadcast %cst_9 : f32 to vector<8x128xf32>
    %14 = arith.select %10, %12, %13 : vector<8x128xi1>, vector<8x128xf32>
    %c0_10 = arith.constant 0 : index
    %c0_11 = arith.constant 0 : index
    %15 = vector.load %arg6[%c0_10, %c0_11] : memref<8x128xf32, #tpu.memory_space<vmem>>, vector<8x128xf32>
    tpu.vector_store %arg6[%c0_10, %c0_11], %14 {strides = array<i32>} : memref<8x128xf32, #tpu.memory_space<vmem>>, vector<8x128xf32>,
    return
  }
  func.func @transform_0(%arg0: i32, %arg1: i32) -> (i32, i32) {
    %c0_i32 = arith.constant 0 : i32
    %c0_i32_0 = arith.constant 0 : i32
    return %arg1, %c0_i32 : i32, i32
  }
  func.func @transform_1(%arg0: i32, %arg1: i32) -> (i32, i32) {
    %c0_i32 = arith.constant 0 : i32
    %c0_i32_0 = arith.constant 0 : i32
    return %c0_i32, %arg0 : i32, i32
  }
  func.func @transform_2(%arg0: i32, %arg1: i32) -> (i32, i32) {
    %c0_i32 = arith.constant 0 : i32
    %c0_i32_0 = arith.constant 0 : i32
    return %c0_i32, %arg0 : i32, i32
  }
  func.func @transform_3(%arg0: i32, %arg1: i32) -> (i32, i32) {
    %c0_i32 = arith.constant 0 : i32
    return %arg1, %arg0 : i32, i32
  }
  func.func @transform_4(%arg0: i32, %arg1: i32) -> (i32, i32) {
    %c0_i32 = arith.constant 0 : i32
    return %arg1, %arg0 : i32, i32
  }
}

</mosaic_0001>

<bundles_post_ra>
// kernel: tpu_custom_call.1
= control target key start
LH: loop header
LB: loop body
LE: loop exit
PB: predicated region body
PF: predicated region fallthrough
CT: control target
= control target key end

     0   :  { %9 = vsyncpa [#allocation3], 0  ;;  %s323_s0 = inlined_call_operand.hbm [shape: f32[8,32], index: 0, kind: input, shape index: {}]   ;;  %s324_s1 = inlined_call_operand.hbm [shape: f32[32,128], index: 1, kind: input, shape index: {}]   ;;  %s325_s2 = inlined_call_operand.vmem [shape: f32[1,128], index: 2, kind: input, shape index: {}]   ;;  %s326_s3 = inlined_call_operand.hbm [shape: u32[8,128], index: 3, kind: input, shape index: {}]   ;;  %s327_s4 = inlined_call_operand.hbm [shape: f32[8,128], index: 4, kind: output, shape index: {}]  }
   0x1   :  { %10 = vsyncpa [#allocation6], 0 }
   0x2   :  { %11 = vsyncpa [#allocation4], 0  ;;  %s275_s15 = smov [#allocation5]  }
   0x3   :  { %s27_s16 = sshll.u32 %s275_s15, 4  ;;  %s28_s16 = int_to_ptr.vmem [resolvable:$true] %s27_s16 }
   0x4   :  { %s197_s17 = scalar_lea.vmem %s28_s16, 512  ;;  %p202_p1 = scmp.lt.s32.totalorder %s28_s16, %s28_s16 }
   0x5   :  { %p198_p0 = scmp.ne.s32.totalorder %s28_s16, %s197_s17  ;;  %p203_p2 = scmp.lt.s32.totalorder %s197_s17, %s197_s17 }
   0x7   :  { %p204_p3 = por %p203_p2, %p202_p1 }
   0x9   :  { %p205_p4 = pnand %p204_p3, %p198_p0 }
   0xb   :  { %208 = shalt.err (!%p205_p4)
}
   0xc   :  { %s276_s18 = smov 128   ;;  %s277_s19 = smov 8  }
   0xd   :  { %33 = dma.hbm_to_vmem [thread:$0]  %s324_s1, 512, %s28_s16, [#allocation6], %s276_s18, %s276_s18, %s277_s19  }
   0xe   :  { %s278_s22 = smov [#allocation2]   ;;  %s279_s24 = smov [#allocation7]  }
   0xf   :  { %s18_s23 = sshll.u32 %s278_s22, 4  ;;  %s42_s25 = sshll.u32 %s279_s24, 4  ;;  %s19_s23 = int_to_ptr.vmem [resolvable:$true] %s18_s23  ;;  %s43_s25 = int_to_ptr.vmem [resolvable:$true] %s42_s25 }
  0x10   :  { %s217_s26 = scalar_lea.vmem %s19_s23, 128  ;;  %p222_p6 = scmp.lt.s32.totalorder %s19_s23, %s19_s23 }
  0x11   :  { %p218_p5 = scmp.ne.s32.totalorder %s19_s23, %s217_s26  ;;  %p223_p7 = scmp.lt.s32.totalorder %s217_s26, %s217_s26 }
  0x13   :  { %p224_p8 = por %p223_p7, %p222_p6 }
  0x15   :  { %p225_p9 = pnand %p224_p8, %p218_p5 }
  0x17   :  { %228 = shalt.err (!%p225_p9)
}
  0x18   :  { %21 = dma.hbm_to_vmem [thread:$0]  %s323_s0, 128, %s19_s23, [#allocation3]  }
  0x19   :  { %s237_s29 = scalar_lea.vmem %s43_s25, 128  ;;  %p242_p11 = scmp.lt.s32.totalorder %s43_s25, %s43_s25 }
  0x1a   :  { %p238_p10 = scmp.ne.s32.totalorder %s43_s25, %s237_s29  ;;  %p243_p12 = scmp.lt.s32.totalorder %s237_s29, %s237_s29 }
  0x1c   :  { %p244_p13 = por %p243_p12, %p242_p11 }
  0x1e   :  { %p245_p0 = pnand %p244_p13, %p238_p10 }
  0x20   :  { %248 = shalt.err (!%p245_p0)
}
  0x21   :  { %45 = dma.hbm_to_vmem [thread:$0]  %s326_s3, 128, %s43_s25, [#allocation6]  }
  0x22   :  { %269 = dma.done.wait [#allocation3], 128  }
  0x23   :  { %270 = vsyncadd [#allocation3], 4294967168 }
  0x24   :  { %271 = dma.done.wait [#allocation6], 640  }
  0x25   :  { %272 = vsyncadd [#allocation6], 4294966656  ;;  %v280_v0 = vmov 0.0   ;;  %vm281_vm0 = vmmov 0   ;;  %v59_v1 = vld [vmem:[#allocation5 + $0x18] sm:$0xff]  ;;  %v58_v2 = vld [vmem:[#allocation5 + $0x10] sm:$0xff] }
  0x26   :  { %170 = vmatprep.subr.mxu0 %v280_v0  ;;  %178 = vmatprep.mubr.msk.f32.mxu0 %vm281_vm0, %v280_v0  ;;  %v57_v3 = vld [vmem:[#allocation5 + $0x8] sm:$0xff]  ;;  %v56_v4 = vld [vmem:[#allocation5] sm:$0xff]  ;;  %v55_v5 = vld [vmem:[#allocation2] sm:$0xff]  ;;  %vm67_vm1 = vcmask 261120   ;;  %s282_s5 = smov [#allocation8]  }
  0x27   :  { %171 = vmatpush3.msra.mxu0 %v59_v1  ;;  %v163_v6 = vld [vmem:[%s325_s2] ss:$0 sm:$0xff]  ;;  %v142_v9 = vld [vmem:[#allocation7] sm:$0xff]  ;;  %s153_s6 = sshll.u32 %s282_s5, 4  ;;  %s154_s6 = int_to_ptr.vmem [resolvable:$true] %s153_s6 }
  0x28   :  { %172 = vmatprep.subr.mxu0 %v280_v0  ;;  %vm143_vm2 = vcmp.lt.u32.totalorder %v142_v9, 1503238553  ;;  %s249_s7 = scalar_lea.vmem %s154_s6, 128  ;;  %p254_p2 = scmp.lt.s32.totalorder %s154_s6, %s154_s6 }
  0x29   :  { %173 = vmatpush3.msra.mxu0 %v58_v2  ;;  %p250_p1 = scmp.ne.s32.totalorder %s154_s6, %s249_s7  ;;  %p255_p3 = scmp.lt.s32.totalorder %s249_s7, %s249_s7 }
  0x2a   :  { %174 = vmatprep.subr.mxu0 %v280_v0 }
  0x2b   :  { %175 = vmatpush3.msra.mxu0 %v57_v3  ;;  %p256_p4 = por %p255_p3, %p254_p2 }
  0x2c   :  { %176 = vmatprep.subr.mxu0 %v280_v0 }
  0x2d   :  { %177 = vmatpush3.msra.mxu0 %v56_v4  ;;  %p257_p5 = pnand %p256_p4, %p250_p1 }
  0x2e   :  { %179 = vmatmul.mubr.msk.f32.vlgmr.msra.gmra.mxu0 %vm67_vm1, %v55_v5 }
  0xee   :  { %v137_v7 = vpop.f32.mrf.mxu0 }
  0xef   :  { %v138_v8 = vadd.f32 %v163_v6, %v137_v7 }
  0xf0   :  { %v180_v10 = vpop.f32.mrf.mxu0 }
  0xf1   :  { %v141_v11 = vmax.f32 %v138_v8, 0.0 }
  0xf3   :  { %v144_v12 = vmul.f32 2.857143, %v141_v11 }
  0xf5   :  { %v145_v13 = vsel %vm143_vm2, %v144_v12, 0.0 }
  0xf6   :  { %146 = vst [vmem:[#allocation8] sm:$0xff] %v145_v13 }
  0xf7   :  { %260 = shalt.err (!%p257_p5)
}
  0xf8   :  { %156 = dma.vmem_to_hbm [thread:$0]  %s154_s6, 128, %s327_s4, [#allocation4]  }
  0xf9   :  { %273 = dma.done.wait [#allocation4], 128  }
  0xfa   :  { %274 = vsyncadd [#allocation4], 4294967168 }
  0xfb   :  { %160 = vsyncpa [#allocation3], 1 }
  0xfc   :  { %161 = vsyncpa [#allocation6], 1 }
  0xfd   :  { %162 = vsyncpa [#allocation4], 1 }

</bundles_post_ra>
